<compile_context>
chip_gen: v7x
topology: tpu7x:2x2x1
jax: 0.10.0
libtpu: 0.0.40
codegen_flags: <defaults>
</compile_context>

<pallas_src>
import functools

import jax
import jax.numpy as jnp
from jax.experimental import pallas as pl
from jax.experimental.pallas import tpu as pltpu

_NEG_PAD = -1e30
_VMEM_COMPUTE_BUDGET = 40 * 1024 * 1024   # per-step live-VMEM target (all generations)
_VMEM_LIMIT_BYTES = 48 * 1024 * 1024      # scoped-VMEM limit (< v7x 64 MiB physical)
_MAX_BLOCK_N = 2048


def _round_up(x, m):
    return -(-x // m) * m


# ----------------------------------------------------------------------------
# Kernel: one fused matmul + (log_)softmax per row tile.  No masking needed:
# column padding is handled by the folded mask row in W.
# ----------------------------------------------------------------------------
def _fused_decoder_kernel(x_ref, w_ref, out_ref, *, log_space):
    """x_ref   : (block_n, k_pad)     compute dtype
       w_ref   : (k_pad, mod1_pad)    compute dtype, VMEM-resident across grid
       out_ref : (block_n, mod1_pad)  out dtype
    """
    logits = jnp.dot(x_ref[...], w_ref[...], preferred_element_type=jnp.float32)
    m = jnp.max(logits, axis=-1, keepdims=True)
    shifted = logits - m
    p = jnp.exp(shifted)                            # single EUP exp pass
    s = jnp.sum(p, axis=-1, keepdims=True)
    if log_space:
        out = shifted - jnp.log(s)
    else:
        out = p * pl.reciprocal(s, approx=True)     # EUP vrcp; frees VPU divide
    out_ref[...] = out.astype(out_ref.dtype)


# ----------------------------------------------------------------------------
# Wrapper-side folding helpers (plain JAX glue; hoisted/fused under jit).
# ----------------------------------------------------------------------------
def _fold_weight(alpha_mod1, beta, beta1, mod1_batch_bias, k_pad, mod1_pad,
                 compute_dtype, *, col_mask):
    """W = [beta1@alpha^T ; beta@alpha^T ; bias ; mask_row?], padded to (k_pad, mod1_pad).

    When col_mask: an extra row that is 0 on valid columns and -1e30 on padded columns;
    paired with an always-1 column in x it masks padded logits without in-kernel VPU work.
    """
    alpha_t = alpha_mod1.astype(jnp.float32).T                     # (emd_dim, mod1_dim)
    w = jnp.concatenate(
        [beta1.astype(jnp.float32) @ alpha_t,
         beta.astype(jnp.float32) @ alpha_t,
         mod1_batch_bias.astype(jnp.float32)], axis=0)             # (dim+z_dim+nb, mod1_dim)
    k, mod1_dim = w.shape
    w = jnp.pad(w, ((0, 0), (0, mod1_pad - mod1_dim)))
    if col_mask:
        mask_row = jnp.concatenate(
            [jnp.zeros((1, mod1_dim), jnp.float32),
             jnp.full((1, mod1_pad - mod1_dim), _NEG_PAD, jnp.float32)], axis=1)
        w = jnp.concatenate([w, mask_row], axis=0)
        k += 1
    w = jnp.pad(w, ((0, k_pad - k), (0, 0)))
    return w.astype(compute_dtype)


def _build_x(theta, theta1, batch_indices, num_batch, k_pad, n_pad, compute_dtype,
             *, col_mask):
    """x = [theta1 | theta | onehot(batch_indices) | 1?], zero-padded to (n_pad, k_pad)."""
    n = theta.shape[0]
    # NOTE: out-of-range indices give an all-zero one-hot row (zero bias) instead of
    # raising, unlike PyTorch advanced indexing.
    onehot = jax.nn.one_hot(batch_indices, num_batch, dtype=jnp.float32)
    parts = [theta1.astype(jnp.float32), theta.astype(jnp.float32), onehot]
    if col_mask:
        parts.append(jnp.ones((n, 1), jnp.float32))
    x = jnp.concatenate(parts, axis=1)
    k = x.shape[1]
    x = jnp.pad(x, ((0, n_pad - n), (0, k_pad - k)))
    return x.astype(compute_dtype)


def topic_mod1(alpha_mod1, beta):
    """PyTorch side-effect attribute (self.Topic_mod1); not part of the forward output."""
    return (alpha_mod1 @ beta.T).T


# ----------------------------------------------------------------------------
# block_n selection under an explicit per-generation-safe VMEM budget.
#   live VMEM ~= 2*x_tile + 2*out_tile + 2*weight + ~3 f32 softmax temporaries
# (weight counted double-buffered even though invariant — conservative, avoids relying
#  on pl.Buffered(1) support).
# ----------------------------------------------------------------------------
def _choose_block_n(n, k_pad, mod1_pad, compute_bytes, out_bytes):
    w_bytes = 2 * k_pad * mod1_pad * compute_bytes
    per_row = (2 * k_pad * compute_bytes          # double-buffered x tile
               + 2 * mod1_pad * out_bytes         # double-buffered output tile
               + 3 * mod1_pad * 4)                # logits / shifted / p (f32)
    cap = (_VMEM_COMPUTE_BUDGET - w_bytes) // per_row
    cap = int(max(8, min(_MAX_BLOCK_N, cap)))
    n8 = _round_up(n, 8)
    if n8 <= cap:                                  # whole input in one grid step
        return n8
    cap8 = max(8, (cap // 8) * 8)
    if n % 8 == 0:
        bn = cap8
        while bn >= 8:                             # prefer a tile that divides n exactly
            if n % bn == 0 and (bn * 4 >= cap8 or bn >= 512):
                return bn
            bn -= 8
    # fall back: MXU-friendly multiple of 128 (rows padded, sliced after the kernel)
    if cap8 >= 128:
        return (cap8 // 128) * 128
    return cap8


# ----------------------------------------------------------------------------
# Public forward.
# ----------------------------------------------------------------------------
def decoder_single_forward(theta, theta1, batch_indices,
                           alpha_mod1, beta, beta1, mod1_batch_bias,
                           *, cross_prediction=False,
                           compute_dtype=jnp.float32,
                           out_dtype=jnp.float32,
                           block_n=None):
    n, z_dim = theta.shape
    dim = theta1.shape[1]
    num_batch, mod1_dim = mod1_batch_bias.shape

    mod1_pad = _round_up(mod1_dim, 128)            # lane-dense output stores
    col_mask = mod1_pad != mod1_dim                # fold padded-column mask into W
    k = dim + z_dim + num_batch + (1 if col_mask else 0)
    k_pad = _round_up(k, 128)                      # lane-dense x, packed-sublane-friendly W

    cbytes = jnp.dtype(compute_dtype).itemsize
    obytes = jnp.dtype(out_dtype).itemsize
    if block_n is None:
        block_n = _choose_block_n(n, k_pad, mod1_pad, cbytes, obytes)
    block_n = max(8, _round_up(block_n, 8))
    n_pad = _round_up(n, block_n)
    grid_n = n_pad // block_n

    w = _fold_weight(alpha_mod1, beta, beta1, mod1_batch_bias,
                     k_pad, mod1_pad, compute_dtype, col_mask=col_mask)
    x = _build_x(theta, theta1, batch_indices, num_batch, k_pad, n_pad,
                 compute_dtype, col_mask=col_mask)

    kernel = functools.partial(_fused_decoder_kernel,
                               log_space=not cross_prediction)

    out = pl.pallas_call(
        kernel,
        out_shape=jax.ShapeDtypeStruct((n_pad, mod1_pad), out_dtype),
        grid_spec=pltpu.PrefetchScalarGridSpec(
            num_scalar_prefetch=0,
            grid=(grid_n,),
            in_specs=[
                pl.BlockSpec((block_n, k_pad), lambda i: (i, 0)),    # row tiles, pipelined
                pl.BlockSpec((k_pad, mod1_pad), lambda i: (0, 0)),   # folded weight, resident
            ],
            out_specs=pl.BlockSpec((block_n, mod1_pad), lambda i: (i, 0)),
        ),
        compiler_params=pltpu.CompilerParams(
            dimension_semantics=("parallel",),      # independent row tiles
            vmem_limit_bytes=_VMEM_LIMIT_BYTES,
        ),
    )(x, w)

    # Aligned common case: no post-kernel slice (kernel is HBM-writeback bound; an XLA
    # slice would be a second full pass over the output).
    if n_pad == n and mod1_pad == mod1_dim:
        return out
    return out[:n, :mod1_dim]


# ----------------------------------------------------------------------------
# Pure-JAX reference (the spec).
# ----------------------------------------------------------------------------
def _reference(theta, theta1, batch_indices, alpha_mod1, beta, beta1,
               mod1_batch_bias, cross_prediction=False):
    m1 = theta1 @ beta1 + theta @ beta
    recon = m1 @ alpha_mod1.T + mod1_batch_bias[batch_indices]
    if cross_prediction:
        return jax.nn.softmax(recon, axis=-1)
    return jax.nn.log_softmax(recon, axis=-1)


if __name__ == "__main__":
    # Small shapes consistent with the module's __init__.
    N = 8
    mod1_dim = 128
    z_dim = 16
    dim = 16
    emd_dim = 32
    num_batch = 4

    key = jax.random.PRNGKey(0)
    ks = jax.random.split(key, 7)

    alpha_mod1 = jax.random.normal(ks[0], (mod1_dim, emd_dim), jnp.float32)
    beta = jax.random.normal(ks[1], (z_dim, emd_dim), jnp.float32)
    beta1 = jax.random.normal(ks[2], (dim, emd_dim), jnp.float32)
    mod1_batch_bias = jax.random.normal(ks[3], (num_batch, mod1_dim), jnp.float32)

    theta = jax.random.normal(ks[4], (N, z_dim), jnp.float32)
    theta1 = jax.random.normal(ks[5], (N, dim), jnp.float32)
    batch_indices = jax.random.randint(ks[6], (N,), 0, num_batch, jnp.int32)

    args = (theta, theta1, batch_indices, alpha_mod1, beta, beta1, mod1_batch_bias)

    # ---- f32 log_softmax path (aligned; no post-kernel slice) ----------------
    fwd_f32 = jax.jit(functools.partial(decoder_single_forward,
                                        compute_dtype=jnp.float32))
    out_f32 = jax.block_until_ready(fwd_f32(*args))
    ref = _reference(*args)
    assert out_f32.shape == (N, mod1_dim)
    err_f32 = float(jnp.max(jnp.abs(out_f32 - ref)))
    assert err_f32 < 5e-3, f"f32 log_softmax mismatch: {err_f32}"

    # ---- f32 softmax path (cross_prediction=True, approx EUP reciprocal) -----
    fwd_sm = jax.jit(functools.partial(decoder_single_forward,
                                       compute_dtype=jnp.float32,
                                       cross_prediction=True))
    out_sm = jax.block_until_ready(fwd_sm(*args))
    ref_sm = _reference(*args, cross_prediction=True)
    err_sm = float(jnp.max(jnp.abs(out_sm - ref_sm)))
    assert err_sm < 5e-3, f"softmax mismatch: {err_sm}"

    # ---- non-aligned shapes (exercises folded column mask + row padding + slice)
    N2, mod1_dim2 = 10, 100
    k2 = jax.random.split(jax.random.PRNGKey(1), 7)
    alpha2 = jax.random.normal(k2[0], (mod1_dim2, emd_dim), jnp.float32)
    bias2 = jax.random.normal(k2[3], (num_batch, mod1_dim2), jnp.float32)
    theta_2 = jax.random.normal(k2[4], (N2, z_dim), jnp.float32)
    theta1_2 = jax.random.normal(k2[5], (N2, dim), jnp.float32)
    bi_2 = jax.random.randint(k2[6], (N2,), 0, num_batch, jnp.int32)
    args2 = (theta_2, theta1_2, bi_2, alpha2, beta, beta1, bias2)
    out_na = jax.block_until_ready(
        jax.jit(functools.partial(decoder_single_forward,
                                  compute_dtype=jnp.float32))(*args2))
    ref_na = _reference(*args2)
    assert out_na.shape == (N2, mod1_dim2)
    err_na = float(jnp.max(jnp.abs(out_na - ref_na)))
    assert err_na < 5e-3, f"non-aligned log_softmax mismatch: {err_na}"

    # ---- bf16 compute fast path ----------------------------------------------
    # Checked against a reference built with the *same* folded bf16 operands and f32
    # accumulation, so the tolerance only covers accumulation-order differences.
    fwd_bf16 = jax.jit(functools.partial(decoder_single_forward,
                                         compute_dtype=jnp.bfloat16))
    out_bf16 = jax.block_until_ready(fwd_bf16(*args))
    k_tot = dim + z_dim + num_batch
    k_pad = _round_up(k_tot, 128)
    w_bf = _fold_weight(alpha_mod1, beta, beta1, mod1_batch_bias,
                        k_pad, mod1_dim, jnp.bfloat16, col_mask=False)
    x_bf = _build_x(theta, theta1, batch_indices, num_batch, k_pad, N,
                    jnp.bfloat16, col_mask=False)
    logits_bf = (x_bf.astype(jnp.float32) @ w_bf.astype(jnp.float32))[:N, :mod1_dim]
    ref_bf = jax.nn.log_softmax(logits_bf, axis=-1)
    err_bf = float(jnp.max(jnp.abs(out_bf16 - ref_bf)))
    assert err_bf < 5e-2, f"bf16 mismatch vs bf16-emulated reference: {err_bf}"

    print("KERNEL_OK")
</pallas_src>

<mosaic_0001>
module attributes {stable_mosaic.version = 11 : i64} {
  func.func @_fused_decoder_kernel(%arg0: i32, %arg1: memref<8x128xf32, #tpu.memory_space<vmem>>, %arg2: memref<128x128xf32, #tpu.memory_space<vmem>>, %arg3: memref<8x128xf32, #tpu.memory_space<vmem>>) attributes {dimension_semantics = [#tpu.dimension_semantics<parallel>], iteration_bounds = array<i64: 1>, scalar_prefetch = 0 : i64, scratch_operands = 0 : i64, tpu.core_type = #tpu.core_type<tc>, window_params = [{transform_indices = @transform_0, window_bounds = array<i64: 8, 128>}, {pipeline_mode = #tpu.pipeline_mode<synchronous>, transform_indices = @transform_1, window_bounds = array<i64: 128, 128>}, {transform_indices = @transform_2, window_bounds = array<i64: 8, 128>}]} {
    %c0 = arith.constant 0 : index
    %c0_0 = arith.constant 0 : index
    %0 = vector.load %arg1[%c0, %c0_0] : memref<8x128xf32, #tpu.memory_space<vmem>>, vector<8x128xf32>
    %c0_1 = arith.constant 0 : index
    %c0_2 = arith.constant 0 : index
    %1 = vector.load %arg2[%c0_1, %c0_2] : memref<128x128xf32, #tpu.memory_space<vmem>>, vector<128x128xf32>
    %cst = arith.constant dense<0.000000e+00> : vector<8x128xf32>
    %2 = tpu.matmul %0, %1, %cst {dimension_numbers = #tpu.dot_dimension_numbers<[1], [0], [0], [1], [0, 0, 1, 1], [], []>} : vector<8x128xf32>, vector<128x128xf32>, vector<8x128xf32> -> vector<8x128xf32>
    %cst_3 = arith.constant dense<0xFF800000> : vector<8xf32>
    %3 = vector.multi_reduction <maximumf>, %2, %cst_3 [1] : vector<8x128xf32> to vector<8xf32>
    %4 = vector.shape_cast %3 : vector<8xf32> to vector<8x1xf32>
    %5 = vector.broadcast %4 : vector<8x1xf32> to vector<8x128xf32>
    %6 = arith.subf %2, %5 : vector<8x128xf32>
    %7 = math.exp %6 : vector<8x128xf32>
    %cst_4 = arith.constant dense<0.000000e+00> : vector<8xf32>
    %8 = vector.multi_reduction <add>, %7, %cst_4 [1] : vector<8x128xf32> to vector<8xf32>
    %9 = vector.shape_cast %8 : vector<8xf32> to vector<8x1xf32>
    %10 = math.log %9 : vector<8x1xf32>
    %11 = vector.broadcast %10 : vector<8x1xf32> to vector<8x128xf32>
    %12 = arith.subf %6, %11 : vector<8x128xf32>
    %c0_5 = arith.constant 0 : index
    %c0_6 = arith.constant 0 : index
    %13 = vector.load %arg3[%c0_5, %c0_6] : memref<8x128xf32, #tpu.memory_space<vmem>>, vector<8x128xf32>
    tpu.vector_store %arg3[%c0_5, %c0_6], %12 {strides = array<i32>} : memref<8x128xf32, #tpu.memory_space<vmem>>, vector<8x128xf32>,
    return
  }
  func.func @transform_0(%arg0: i32) -> (i32, i32) {
    %c0_i32 = arith.constant 0 : i32
    %c0_i32_0 = arith.constant 0 : i32
    return %arg0, %c0_i32 : i32, i32
  }
  func.func @transform_1(%arg0: i32) -> (i32, i32) {
    %c0_i32 = arith.constant 0 : i32
    %c0_i32_0 = arith.constant 0 : i32
    %c0_i32_1 = arith.constant 0 : i32
    return %c0_i32, %c0_i32_0 : i32, i32
  }
  func.func @transform_2(%arg0: i32) -> (i32, i32) {
    %c0_i32 = arith.constant 0 : i32
    %c0_i32_0 = arith.constant 0 : i32
    return %arg0, %c0_i32 : i32, i32
  }
}

</mosaic_0001>

<bundles_post_ra>
// kernel: decoder_single_forward.1
= control target key start
LH: loop header
LB: loop body
LE: loop exit
PB: predicated region body
PF: predicated region fallthrough
CT: control target
= control target key end

     0   :  { %v232_v3 = vmov 0.0|0.0   ;;  %vm233_vm0 = vmmov 0   ;;  %v234_v6 = vmov 0.0   ;;  %s314_s0 = inlined_call_operand.vmem [shape: f32[8,128], index: 0, kind: input, shape index: {}]   ;;  %s315_s1 = inlined_call_operand.vmem [shape: f32[128,128], index: 1, kind: input, shape index: {}]   ;;  %s316_s2 = inlined_call_operand.hbm [shape: f32[8,128], index: 2, kind: output, shape index: {}]  }
   0x1   :  { %v13_v0 = vld [vmem:[%s315_s1] sm:$0xff]  ;;  %v14_v1 = vld [vmem:[%s315_s1 + $0x8] sm:$0xff]  ;;  %v15_v2 = vld [vmem:[%s315_s1 + $0x10] sm:$0xff]  ;;  %176 = vmatprep.subr.bf16.mxu0 %v232_v3  ;;  %173 = vmatprep.mubr.msk.f32.mxu0 %vm233_vm0, %v234_v6 }
   0x2   :  { %v177_v4 = vpack.c.bf16 %v14_v1, %v13_v0  ;;  %v16_v5 = vld [vmem:[%s315_s1 + $0x18] sm:$0xff]  ;;  %v17_v8 = vld [vmem:[%s315_s1 + $0x20] sm:$0xff]  ;;  %v18_v9 = vld [vmem:[%s315_s1 + $0x28] sm:$0xff] }
   0x3   :  { %v180_v7 = vpack.c.bf16 %v16_v5, %v15_v2 }
   0x4   :  { %178 = vmatpush3.bf16.msra.mxu0 %v177_v4 }
   0x5   :  { %179 = vmatprep.subr.bf16.mxu0 %v232_v3 }
   0x6   :  { %7 = vsyncpa [#allocation3], 0  ;;  %v183_v10 = vpack.c.bf16 %v18_v9, %v17_v8  ;;  %v19_v11 = vld [vmem:[%s315_s1 + $0x30] sm:$0xff]  ;;  %v20_v12 = vld [vmem:[%s315_s1 + $0x38] sm:$0xff] }
   0x7   :  { %v186_v13 = vpack.c.bf16 %v20_v12, %v19_v11  ;;  %v21_v14 = vld [vmem:[%s315_s1 + $0x40] sm:$0xff]  ;;  %v22_v15 = vld [vmem:[%s315_s1 + $0x48] sm:$0xff]  ;;  %v23_v17 = vld [vmem:[%s315_s1 + $0x50] sm:$0xff] }
   0x8   :  { %181 = vmatpush3.bf16.msra.mxu0 %v180_v7  ;;  %v189_v16 = vpack.c.bf16 %v22_v15, %v21_v14  ;;  %v24_v18 = vld [vmem:[%s315_s1 + $0x58] sm:$0xff]  ;;  %v25_v20 = vld [vmem:[%s315_s1 + $0x60] sm:$0xff]  ;;  %v26_v21 = vld [vmem:[%s315_s1 + $0x68] sm:$0xff] }
   0x9   :  { %182 = vmatprep.subr.bf16.mxu0 %v232_v3  ;;  %v192_v19 = vpack.c.bf16 %v24_v18, %v23_v17  ;;  %v195_v22 = vpack.c.bf16 %v26_v21, %v25_v20  ;;  %v27_v23 = vld [vmem:[%s315_s1 + $0x70] sm:$0xff]  ;;  %v28_v24 = vld [vmem:[%s315_s1 + $0x78] sm:$0xff]  ;;  %v12_v26 = vld [vmem:[%s314_s0] sm:$0xff]  ;;  %s235_s1 = smov [#allocation2]  }
   0xa   :  { %v198_v25 = vpack.c.bf16 %v28_v24, %v27_v23  ;;  %s116_s15 = sshll.u32 %s235_s1, 4  ;;  %s117_s15 = int_to_ptr.vmem [resolvable:$true] %s116_s15 }
   0xb   :  { %s208_s0 = scalar_lea.vmem %s117_s15, 128  ;;  %p213_p1 = scmp.lt.s32.totalorder %s117_s15, %s117_s15 }
   0xc   :  { %184 = vmatpush3.bf16.msra.mxu0 %v183_v10  ;;  %p209_p0 = scmp.ne.s32.totalorder %s117_s15, %s208_s0  ;;  %p214_p2 = scmp.lt.s32.totalorder %s208_s0, %s208_s0 }
   0xd   :  { %185 = vmatprep.subr.bf16.mxu0 %v232_v3 }
   0xe   :  { %p215_p3 = por %p214_p2, %p213_p1 }
  0x10   :  { %187 = vmatpush3.bf16.msra.mxu0 %v186_v13  ;;  %p216_p4 = pnand %p215_p3, %p209_p0 }
  0x11   :  { %188 = vmatprep.subr.bf16.mxu0 %v232_v3 }
  0x14   :  { %190 = vmatpush3.bf16.msra.mxu0 %v189_v16 }
  0x15   :  { %191 = vmatprep.subr.bf16.mxu0 %v232_v3 }
  0x18   :  { %193 = vmatpush3.bf16.msra.mxu0 %v192_v19 }
  0x19   :  { %194 = vmatprep.subr.bf16.mxu0 %v232_v3 }
  0x1c   :  { %196 = vmatpush3.bf16.msra.mxu0 %v195_v22 }
  0x1d   :  { %197 = vmatprep.subr.bf16.mxu0 %v232_v3 }
  0x20   :  { %199 = vmatpush3.bf16.msra.mxu0 %v198_v25 }
  0x23   :  { %174 = vmatmul.mubr.f32.vlgmr.msra.gmra.mrb[0].mxu0 %v12_v26 }
  0xf6   :  { %v95_v27 = vpop.f32.mrb[0].mxu0 }
  0xf7   :  { %99 = vmax.xlane.f32.xlu0 %v95_v27  ;;  %v175_v28 = vpop.f32.mrb[1].mxu0 }
 0x184   :  { %v100_v29 = vpop.xlane.xlu0 %99 }
 0x185   :  { %v101_v30 = vsub.f32 %v95_v27, %v100_v29 }
 0x187   :  { %v102_v31 = vmul.f32 1.442695, %v101_v30 }
 0x189   :  { %204 = vpow2.f32 %v102_v31 }
 0x193   :  { %v205_v32 = vpop.eup %204 }
 0x194   :  { %104 = vadd.xlane.f32.xlu0 %v205_v32 }
 0x221   :  { %v105_v33 = vpop.xlane.xlu0 %104 }
 0x222   :  { %206 = vlog2.f32 %v105_v33 }
 0x22c   :  { %v207_v34 = vpop.eup %206 }
 0x22d   :  { %v107_v35 = vmul.f32 0.6931472, %v207_v34 }
 0x22f   :  { %v108_v36 = vsub.f32 %v101_v30, %v107_v35 }
 0x231   :  { %109 = vst [vmem:[#allocation2] sm:$0xff] %v108_v36 }
 0x232   :  { %219 = shalt.err (!%p216_p4)
}
 0x233   :  { %s220_s18 = scalar_lea.hbm %s316_s2, 128 }
 0x234   :  { %p221_p5 = scmp.ne.s32.totalorder %s316_s2, %s220_s18  ;;  %p224_p6 = scmp.lt.u32.totalorder %s220_s18, %s316_s2 }
 0x236   :  { %p226_p7 = pnand %p224_p6, %p221_p5 }
 0x238   :  { %229 = shalt.err (!%p226_p7)
}
 0x239   :  { %119 = dma.vmem_to_hbm [thread:$0]  %s117_s15, 128, %s316_s2, [#allocation3]  }
 0x23a   :  { %230 = dma.done.wait [#allocation3], 128  }
 0x23b   :  { %231 = vsyncadd [#allocation3], 4294967168 }
 0x23c   :  { %123 = vsyncpa [#allocation3], 1 }

</bundles_post_ra>
